<compile_context>
chip_gen: v7x
topology: tpu7x:2x2x1
jax: 0.10.0
libtpu: 0.0.40
codegen_flags: <defaults>
</compile_context>

<pallas_src>
import functools

import jax
import jax.numpy as jnp
from jax import lax
from jax.experimental import pallas as pl
from jax.experimental.pallas import tpu as pltpu


def _fused_block_kernel(*refs, H, W, N, is_res, same_channels, has_idx):
    """Fused conv3x3+BN+GELU (x2) + optional residual, entirely in VMEM."""
    if has_idx:
        (idx_ref, x_ref, w1_ref, g1_ref, be1_ref,
         w2_ref, g2_ref, be2_ref, out_ref) = refs
    else:
        (x_ref, w1_ref, g1_ref, be1_ref,
         w2_ref, g2_ref, be2_ref, out_ref) = refs

    HW = H * W
    L = N * HW                      # batched lane extent (all samples side by side)
    inv_count = 1.0 / float(L)

    # ---- within-sample position / column index, computed once ---------------
    if has_idx:
        pos_s = idx_ref[0:1, :]     # (1, L)  h*W + w within each sample
        w_idx = idx_ref[1:2, :]     # (1, L)  w within each row
    else:
        pos = lax.broadcasted_iota(jnp.int32, (1, L), 1)
        pos_s = jnp.bitwise_and(pos, HW - 1)   # HW is a power of two
        w_idx = jnp.bitwise_and(pos, W - 1)    # W  is a power of two

    # ---- the 9 tap-validity masks, hoisted out of both stages ---------------
    row_lo = pos_s >= W              # dest h >= 1    (needed when dy == 0)
    row_hi = pos_s < (H - 1) * W     # dest h <= H-2  (needed when dy == 2)
    col_lo = w_idx >= 1              # dest w >= 1    (needed when dx == 0)
    col_hi = w_idx <= W - 2          # dest w <= W-2  (needed when dx == 2)
    masks = []
    for dy in range(3):
        for dx in range(3):
            m = None
            if dy == 0:
                m = row_lo
            elif dy == 2:
                m = row_hi
            if dx == 0:
                m = col_lo if m is None else jnp.logical_and(m, col_lo)
            elif dx == 2:
                m = col_hi if m is None else jnp.logical_and(m, col_hi)
            masks.append(m)

    def conv3x3(xb, wmat):
        """3x3 same-conv of the whole batch as ONE matmul: (Cout,9C)@(9C,N*HW).

        Each tap is a circular lane rotation (XLU) of the batched activation;
        the hoisted masks zero every destination that corresponds to "same"
        padding, which also covers every position where the rotation wrapped
        across a sample (or batch) boundary -- the halo never exists anywhere.
        The 9 masked taps are concatenated register-resident (no VMEM scratch,
        no partial-sublane stores, no reload) and fed straight to the MXU.
        """
        taps = []
        for dy in range(3):
            for dx in range(3):
                s = (dy - 1) * W + (dx - 1)                  # flat source offset
                tap = xb if s == 0 else pltpu.roll(xb, (-s) % L, 1)
                m = masks[dy * 3 + dx]
                if m is not None:
                    tap = jnp.where(m, tap, 0.0)
                taps.append(tap)
        col = jnp.concatenate(taps, axis=0)                  # (9*C, L)
        return jnp.dot(wmat, col, preferred_element_type=jnp.float32)

    def bn_gelu(y, gamma, beta):
        """Train-mode BatchNorm2d (exact full-batch stats, one pass) + erf GELU."""
        ch_sum = jnp.sum(y, axis=1, keepdims=True)           # single lane reduction
        ch_sumsq = jnp.sum(y * y, axis=1, keepdims=True)
        mean = ch_sum * inv_count
        var = ch_sumsq * inv_count - mean * mean             # biased variance
        scale = gamma * lax.rsqrt(var + 1e-5)
        shift = beta - mean * scale
        z = y * scale + shift
        return 0.5 * z * (1.0 + lax.erf(z * 0.7071067811865476))

    # ---- batch all samples along lanes (128-aligned concat: cheap) ----------
    xs = [x_ref[n].astype(jnp.float32) for n in range(N)]
    xb = xs[0] if N == 1 else jnp.concatenate(xs, axis=1)    # (Cin, N*HW)

    # Stage 1 and stage 2; x1 never leaves VMEM.  Conv bias omitted: it is
    # exactly cancelled by the train-mode batch-mean subtraction.
    x1 = bn_gelu(conv3x3(xb, w1_ref[...]), g1_ref[...], be1_ref[...])
    x2 = bn_gelu(conv3x3(x1, w2_ref[...]), g2_ref[...], be2_ref[...])

    if is_res:
        res = xb if same_channels else x1
        x2 = (res + x2) * (1.0 / 1.414)

    for n in range(N):
        # lane-dense (Cout, HW) store from a 128-aligned static lane slice
        out_ref[n] = x2[:, n * HW:(n + 1) * HW].astype(out_ref.dtype)


def _is_pow2(v: int) -> bool:
    return v > 0 and (v & (v - 1)) == 0


def residual_conv_block(x_nchw, params, is_res=False):
    """Forward pass of ResidualConvBlock.  x_nchw: (N, Cin, H, W), PyTorch layout."""
    w1, b1, g1, be1, w2, b2, g2, be2 = params          # conv weights in OIHW
    del b1, b2  # cancelled exactly by train-mode BatchNorm's mean subtraction
    N, Cin, H, W = x_nchw.shape
    Cout = w1.shape[0]
    HW = H * W
    same_channels = (Cin == Cout)

    x_flat = x_nchw.reshape(N, Cin, HW)                # free metadata-only reshape

    def to_mat(w):  # OIHW -> (Cout, 9*Cin), [tap-major, channel-minor] columns
        co, ci = w.shape[0], w.shape[1]
        return jnp.transpose(w, (0, 2, 3, 1)).reshape(co, 9 * ci).astype(jnp.float32)

    def col(v):     # per-channel param -> (C, 1) column for lane broadcast
        return v.reshape(-1, 1).astype(jnp.float32)

    has_idx = not (_is_pow2(HW) and _is_pow2(W))
    args = [x_flat, to_mat(w1), col(g1), col(be1), to_mat(w2), col(g2), col(be2)]
    if has_idx:
        # fallback for non-power-of-two spatial dims: tiny precomputed index table
        pos_s = (jnp.arange(N * HW, dtype=jnp.int32) % HW)
        idx = jnp.stack([pos_s, pos_s % W], axis=0)          # (2, N*HW)
        args = [idx] + args

    kernel = functools.partial(
        _fused_block_kernel, H=H, W=W, N=N, is_res=is_res,
        same_channels=same_channels, has_idx=has_idx)

    vmem = pl.BlockSpec(memory_space=pltpu.MemorySpace.VMEM)
    out_flat = pl.pallas_call(
        kernel,
        out_shape=jax.ShapeDtypeStruct((N, Cout, HW), x_nchw.dtype),
        in_specs=[vmem] * len(args),
        out_specs=vmem,
    )(*args)
    return out_flat.reshape(N, Cout, H, W)


def _reference(x_nchw, params, is_res):
    """Pure-JAX (XLA) reference for correctness checking (keeps the conv bias)."""
    w1, b1, g1, be1, w2, b2, g2, be2 = params

    def block(x, w, b, g, be):
        y = lax.conv_general_dilated(
            x, w, window_strides=(1, 1), padding=((1, 1), (1, 1)),
            dimension_numbers=("NCHW", "OIHW", "NCHW"))
        y = y + b.reshape(1, -1, 1, 1)
        mean = jnp.mean(y, axis=(0, 2, 3), keepdims=True)
        var = jnp.mean((y - mean) ** 2, axis=(0, 2, 3), keepdims=True)
        y = (y - mean) * lax.rsqrt(var + 1e-5)
        y = y * g.reshape(1, -1, 1, 1) + be.reshape(1, -1, 1, 1)
        return 0.5 * y * (1.0 + lax.erf(y / jnp.sqrt(2.0)))

    x1 = block(x_nchw, w1, b1, g1, be1)
    x2 = block(x1, w2, b2, g2, be2)
    if is_res:
        res = x_nchw if x_nchw.shape[1] == x2.shape[1] else x1
        return (res + x2) / 1.414
    return x2


def make_params(key, in_channels, out_channels):
    """Conv weights/biases (OIHW, PyTorch layout); BN gamma=1, beta=0 (PyTorch init)."""
    k1, k2, k3, k4 = jax.random.split(key, 4)
    w1 = 0.1 * jax.random.normal(k1, (out_channels, in_channels, 3, 3), jnp.float32)
    b1 = 0.1 * jax.random.normal(k2, (out_channels,), jnp.float32)
    g1 = jnp.ones((out_channels,), jnp.float32)
    be1 = jnp.zeros((out_channels,), jnp.float32)
    w2 = 0.1 * jax.random.normal(k3, (out_channels, out_channels, 3, 3), jnp.float32)
    b2 = 0.1 * jax.random.normal(k4, (out_channels,), jnp.float32)
    g2 = jnp.ones((out_channels,), jnp.float32)
    be2 = jnp.zeros((out_channels,), jnp.float32)
    return (w1, b1, g1, be1, w2, b2, g2, be2)


if __name__ == "__main__":
    key = jax.random.PRNGKey(0)
    kx, kp, kp2 = jax.random.split(key, 3)

    N, C, H, W = 2, 4, 16, 16
    x = jax.random.normal(kx, (N, C, H, W), jnp.float32)   # PyTorch-style NCHW input

    # same-channels block: exercises the (x + x2)/1.414 residual path + plain path
    params = make_params(kp, in_channels=C, out_channels=C)
    out_res = jax.block_until_ready(residual_conv_block(x, params, is_res=True))
    out_plain = jax.block_until_ready(residual_conv_block(x, params, is_res=False))

    # channel-changing block: exercises the (x1 + x2)/1.414 residual path
    params2 = make_params(kp2, in_channels=C, out_channels=8)
    out_res2 = jax.block_until_ready(residual_conv_block(x, params2, is_res=True))

    ref_res = _reference(x, params, True)
    ref_plain = _reference(x, params, False)
    ref_res2 = _reference(x, params2, True)

    assert out_res.shape == (N, C, H, W)
    assert out_res2.shape == (N, 8, H, W)
    assert jnp.allclose(out_res, ref_res, atol=1e-4, rtol=1e-4)
    assert jnp.allclose(out_plain, ref_plain, atol=1e-4, rtol=1e-4)
    assert jnp.allclose(out_res2, ref_res2, atol=1e-4, rtol=1e-4)

    print("KERNEL_OK")
</pallas_src>

<mosaic_0001>
module attributes {stable_mosaic.version = 11 : i64} {
  func.func @_fused_block_kernel(%arg0: memref<2x4x256xf32, #tpu.memory_space<vmem>>, %arg1: memref<4x36xf32, #tpu.memory_space<vmem>>, %arg2: memref<4x1xf32, #tpu.memory_space<vmem>>, %arg3: memref<4x1xf32, #tpu.memory_space<vmem>>, %arg4: memref<4x36xf32, #tpu.memory_space<vmem>>, %arg5: memref<4x1xf32, #tpu.memory_space<vmem>>, %arg6: memref<4x1xf32, #tpu.memory_space<vmem>>, %arg7: memref<2x4x256xf32, #tpu.memory_space<vmem>>) attributes {dimension_semantics = [], scalar_prefetch = 0 : i64, scratch_operands = 0 : i64, tpu.core_type = #tpu.core_type<tc>} {
    %0 = tpu.iota {dimensions = array<i32: 1>} : vector<1x512xi32>
    %c255_i32 = arith.constant 255 : i32
    %1 = vector.broadcast %c255_i32 : i32 to vector<1x512xi32>
    %2 = arith.andi %0, %1 : vector<1x512xi32>
    %c15_i32 = arith.constant 15 : i32
    %3 = vector.broadcast %c15_i32 : i32 to vector<1x512xi32>
    %4 = arith.andi %0, %3 : vector<1x512xi32>
    %c16_i32 = arith.constant 16 : i32
    %5 = vector.broadcast %c16_i32 : i32 to vector<1x512xi32>
    %6 = arith.cmpi sge, %2, %5 : vector<1x512xi32>
    %c240_i32 = arith.constant 240 : i32
    %7 = vector.broadcast %c240_i32 : i32 to vector<1x512xi32>
    %8 = arith.cmpi slt, %2, %7 : vector<1x512xi32>
    %c1_i32 = arith.constant 1 : i32
    %9 = vector.broadcast %c1_i32 : i32 to vector<1x512xi32>
    %10 = arith.cmpi sge, %4, %9 : vector<1x512xi32>
    %c14_i32 = arith.constant 14 : i32
    %11 = vector.broadcast %c14_i32 : i32 to vector<1x512xi32>
    %12 = arith.cmpi sle, %4, %11 : vector<1x512xi32>
    %13 = arith.andi %6, %10 : vector<1x512xi1>
    %14 = arith.andi %6, %12 : vector<1x512xi1>
    %15 = arith.andi %8, %10 : vector<1x512xi1>
    %16 = arith.andi %8, %12 : vector<1x512xi1>
    %c0 = arith.constant 0 : index
    %c0_0 = arith.constant 0 : index
    %c0_1 = arith.constant 0 : index
    %17 = vector.load %arg0[%c0, %c0_0, %c0_1] : memref<2x4x256xf32, #tpu.memory_space<vmem>>, vector<1x4x256xf32>
    %18 = vector.shape_cast %17 : vector<1x4x256xf32> to vector<4x256xf32>
    %c1 = arith.constant 1 : index
    %c0_2 = arith.constant 0 : index
    %c0_3 = arith.constant 0 : index
    %19 = vector.load %arg0[%c1, %c0_2, %c0_3] : memref<2x4x256xf32, #tpu.memory_space<vmem>>, vector<1x4x256xf32>
    %20 = vector.shape_cast %19 : vector<1x4x256xf32> to vector<4x256xf32>
    %21 = tpu.concatenate %18, %20 in 1 : vector<4x256xf32>, vector<4x256xf32> -> vector<4x512xf32>
    %c0_4 = arith.constant 0 : index
    %c0_5 = arith.constant 0 : index
    %22 = vector.load %arg1[%c0_4, %c0_5] : memref<4x36xf32, #tpu.memory_space<vmem>>, vector<4x36xf32>
    %c17_i32 = arith.constant 17 : i32
    %23 = tpu.dynamic_rotate %21 by %c17_i32 dim 1 : vector<4x512xf32>, i32 -> vector<4x512xf32>
    %cst = arith.constant 0.000000e+00 : f32
    %24 = vector.shape_cast %13 : vector<1x512xi1> to vector<1x512xi1>
    %25 = vector.broadcast %24 : vector<1x512xi1> to vector<4x512xi1>
    %26 = vector.broadcast %cst : f32 to vector<4x512xf32>
    %27 = arith.select %25, %23, %26 : vector<4x512xi1>, vector<4x512xf32>
    %c16_i32_6 = arith.constant 16 : i32
    %28 = tpu.dynamic_rotate %21 by %c16_i32_6 dim 1 : vector<4x512xf32>, i32 -> vector<4x512xf32>
    %cst_7 = arith.constant 0.000000e+00 : f32
    %29 = vector.shape_cast %6 : vector<1x512xi1> to vector<1x512xi1>
    %30 = vector.broadcast %29 : vector<1x512xi1> to vector<4x512xi1>
    %31 = vector.broadcast %cst_7 : f32 to vector<4x512xf32>
    %32 = arith.select %30, %28, %31 : vector<4x512xi1>, vector<4x512xf32>
    %c15_i32_8 = arith.constant 15 : i32
    %33 = tpu.dynamic_rotate %21 by %c15_i32_8 dim 1 : vector<4x512xf32>, i32 -> vector<4x512xf32>
    %cst_9 = arith.constant 0.000000e+00 : f32
    %34 = vector.shape_cast %14 : vector<1x512xi1> to vector<1x512xi1>
    %35 = vector.broadcast %34 : vector<1x512xi1> to vector<4x512xi1>
    %36 = vector.broadcast %cst_9 : f32 to vector<4x512xf32>
    %37 = arith.select %35, %33, %36 : vector<4x512xi1>, vector<4x512xf32>
    %c1_i32_10 = arith.constant 1 : i32
    %38 = tpu.dynamic_rotate %21 by %c1_i32_10 dim 1 : vector<4x512xf32>, i32 -> vector<4x512xf32>
    %cst_11 = arith.constant 0.000000e+00 : f32
    %39 = vector.shape_cast %10 : vector<1x512xi1> to vector<1x512xi1>
    %40 = vector.broadcast %39 : vector<1x512xi1> to vector<4x512xi1>
    %41 = vector.broadcast %cst_11 : f32 to vector<4x512xf32>
    %42 = arith.select %40, %38, %41 : vector<4x512xi1>, vector<4x512xf32>
    %c511_i32 = arith.constant 511 : i32
    %43 = tpu.dynamic_rotate %21 by %c511_i32 dim 1 : vector<4x512xf32>, i32 -> vector<4x512xf32>
    %cst_12 = arith.constant 0.000000e+00 : f32
    %44 = vector.shape_cast %12 : vector<1x512xi1> to vector<1x512xi1>
    %45 = vector.broadcast %44 : vector<1x512xi1> to vector<4x512xi1>
    %46 = vector.broadcast %cst_12 : f32 to vector<4x512xf32>
    %47 = arith.select %45, %43, %46 : vector<4x512xi1>, vector<4x512xf32>
    %c497_i32 = arith.constant 497 : i32
    %48 = tpu.dynamic_rotate %21 by %c497_i32 dim 1 : vector<4x512xf32>, i32 -> vector<4x512xf32>
    %cst_13 = arith.constant 0.000000e+00 : f32
    %49 = vector.shape_cast %15 : vector<1x512xi1> to vector<1x512xi1>
    %50 = vector.broadcast %49 : vector<1x512xi1> to vector<4x512xi1>
    %51 = vector.broadcast %cst_13 : f32 to vector<4x512xf32>
    %52 = arith.select %50, %48, %51 : vector<4x512xi1>, vector<4x512xf32>
    %c496_i32 = arith.constant 496 : i32
    %53 = tpu.dynamic_rotate %21 by %c496_i32 dim 1 : vector<4x512xf32>, i32 -> vector<4x512xf32>
    %cst_14 = arith.constant 0.000000e+00 : f32
    %54 = vector.shape_cast %8 : vector<1x512xi1> to vector<1x512xi1>
    %55 = vector.broadcast %54 : vector<1x512xi1> to vector<4x512xi1>
    %56 = vector.broadcast %cst_14 : f32 to vector<4x512xf32>
    %57 = arith.select %55, %53, %56 : vector<4x512xi1>, vector<4x512xf32>
    %c495_i32 = arith.constant 495 : i32
    %58 = tpu.dynamic_rotate %21 by %c495_i32 dim 1 : vector<4x512xf32>, i32 -> vector<4x512xf32>
    %cst_15 = arith.constant 0.000000e+00 : f32
    %59 = vector.shape_cast %16 : vector<1x512xi1> to vector<1x512xi1>
    %60 = vector.broadcast %59 : vector<1x512xi1> to vector<4x512xi1>
    %61 = vector.broadcast %cst_15 : f32 to vector<4x512xf32>
    %62 = arith.select %60, %58, %61 : vector<4x512xi1>, vector<4x512xf32>
    %63 = tpu.concatenate %27, %32, %37, %42, %21, %47, %52, %57, %62 in 0 : vector<4x512xf32>, vector<4x512xf32>, vector<4x512xf32>, vector<4x512xf32>, vector<4x512xf32>, vector<4x512xf32>, vector<4x512xf32>, vector<4x512xf32>, vector<4x512xf32> -> vector<36x512xf32>
    %cst_16 = arith.constant dense<0.000000e+00> : vector<4x512xf32>
    %64 = tpu.matmul %22, %63, %cst_16 {dimension_numbers = #tpu.dot_dimension_numbers<[1], [0], [0], [1], [0, 0, 1, 1], [], []>} : vector<4x36xf32>, vector<36x512xf32>, vector<4x512xf32> -> vector<4x512xf32>
    %c0_17 = arith.constant 0 : index
    %c0_18 = arith.constant 0 : index
    %65 = vector.load %arg2[%c0_17, %c0_18] : memref<4x1xf32, #tpu.memory_space<vmem>>, vector<4x1xf32>
    %c0_19 = arith.constant 0 : index
    %c0_20 = arith.constant 0 : index
    %66 = vector.load %arg3[%c0_19, %c0_20] : memref<4x1xf32, #tpu.memory_space<vmem>>, vector<4x1xf32>
    %cst_21 = arith.constant dense<0.000000e+00> : vector<4xf32>
    %67 = vector.multi_reduction <add>, %64, %cst_21 [1] : vector<4x512xf32> to vector<4xf32>
    %68 = vector.shape_cast %67 : vector<4xf32> to vector<4x1xf32>
    %69 = arith.mulf %64, %64 : vector<4x512xf32>
    %cst_22 = arith.constant dense<0.000000e+00> : vector<4xf32>
    %70 = vector.multi_reduction <add>, %69, %cst_22 [1] : vector<4x512xf32> to vector<4xf32>
    %71 = vector.shape_cast %70 : vector<4xf32> to vector<4x1xf32>
    %cst_23 = arith.constant 0.001953125 : f32
    %72 = vector.broadcast %cst_23 : f32 to vector<4x1xf32>
    %73 = arith.mulf %68, %72 : vector<4x1xf32>
    %cst_24 = arith.constant 0.001953125 : f32
    %74 = vector.broadcast %cst_24 : f32 to vector<4x1xf32>
    %75 = arith.mulf %71, %74 : vector<4x1xf32>
    %76 = arith.mulf %73, %73 : vector<4x1xf32>
    %77 = arith.subf %75, %76 : vector<4x1xf32>
    %cst_25 = arith.constant 9.99999974E-6 : f32
    %78 = vector.broadcast %cst_25 : f32 to vector<4x1xf32>
    %79 = arith.addf %77, %78 : vector<4x1xf32>
    %80 = math.rsqrt %79 : vector<4x1xf32>
    %81 = arith.mulf %65, %80 : vector<4x1xf32>
    %82 = arith.mulf %73, %81 : vector<4x1xf32>
    %83 = arith.subf %66, %82 : vector<4x1xf32>
    %84 = vector.broadcast %81 : vector<4x1xf32> to vector<4x512xf32>
    %85 = arith.mulf %64, %84 : vector<4x512xf32>
    %86 = vector.broadcast %83 : vector<4x1xf32> to vector<4x512xf32>
    %87 = arith.addf %85, %86 : vector<4x512xf32>
    %cst_26 = arith.constant 5.000000e-01 : f32
    %88 = vector.broadcast %cst_26 : f32 to vector<4x512xf32>
    %89 = arith.mulf %88, %87 : vector<4x512xf32>
    %cst_27 = arith.constant 0.707106769 : f32
    %90 = vector.broadcast %cst_27 : f32 to vector<4x512xf32>
    %91 = arith.mulf %87, %90 : vector<4x512xf32>
    %92 = math.erf %91 : vector<4x512xf32>
    %cst_28 = arith.constant 1.000000e+00 : f32
    %93 = vector.broadcast %cst_28 : f32 to vector<4x512xf32>
    %94 = arith.addf %93, %92 : vector<4x512xf32>
    %95 = arith.mulf %89, %94 : vector<4x512xf32>
    %c0_29 = arith.constant 0 : index
    %c0_30 = arith.constant 0 : index
    %96 = vector.load %arg4[%c0_29, %c0_30] : memref<4x36xf32, #tpu.memory_space<vmem>>, vector<4x36xf32>
    %c17_i32_31 = arith.constant 17 : i32
    %97 = tpu.dynamic_rotate %95 by %c17_i32_31 dim 1 : vector<4x512xf32>, i32 -> vector<4x512xf32>
    %cst_32 = arith.constant 0.000000e+00 : f32
    %98 = vector.shape_cast %13 : vector<1x512xi1> to vector<1x512xi1>
    %99 = vector.broadcast %98 : vector<1x512xi1> to vector<4x512xi1>
    %100 = vector.broadcast %cst_32 : f32 to vector<4x512xf32>
    %101 = arith.select %99, %97, %100 : vector<4x512xi1>, vector<4x512xf32>
    %c16_i32_33 = arith.constant 16 : i32
    %102 = tpu.dynamic_rotate %95 by %c16_i32_33 dim 1 : vector<4x512xf32>, i32 -> vector<4x512xf32>
    %cst_34 = arith.constant 0.000000e+00 : f32
    %103 = vector.shape_cast %6 : vector<1x512xi1> to vector<1x512xi1>
    %104 = vector.broadcast %103 : vector<1x512xi1> to vector<4x512xi1>
    %105 = vector.broadcast %cst_34 : f32 to vector<4x512xf32>
    %106 = arith.select %104, %102, %105 : vector<4x512xi1>, vector<4x512xf32>
    %c15_i32_35 = arith.constant 15 : i32
    %107 = tpu.dynamic_rotate %95 by %c15_i32_35 dim 1 : vector<4x512xf32>, i32 -> vector<4x512xf32>
    %cst_36 = arith.constant 0.000000e+00 : f32
    %108 = vector.shape_cast %14 : vector<1x512xi1> to vector<1x512xi1>
    %109 = vector.broadcast %108 : vector<1x512xi1> to vector<4x512xi1>
    %110 = vector.broadcast %cst_36 : f32 to vector<4x512xf32>
    %111 = arith.select %109, %107, %110 : vector<4x512xi1>, vector<4x512xf32>
    %c1_i32_37 = arith.constant 1 : i32
    %112 = tpu.dynamic_rotate %95 by %c1_i32_37 dim 1 : vector<4x512xf32>, i32 -> vector<4x512xf32>
    %cst_38 = arith.constant 0.000000e+00 : f32
    %113 = vector.shape_cast %10 : vector<1x512xi1> to vector<1x512xi1>
    %114 = vector.broadcast %113 : vector<1x512xi1> to vector<4x512xi1>
    %115 = vector.broadcast %cst_38 : f32 to vector<4x512xf32>
    %116 = arith.select %114, %112, %115 : vector<4x512xi1>, vector<4x512xf32>
    %c511_i32_39 = arith.constant 511 : i32
    %117 = tpu.dynamic_rotate %95 by %c511_i32_39 dim 1 : vector<4x512xf32>, i32 -> vector<4x512xf32>
    %cst_40 = arith.constant 0.000000e+00 : f32
    %118 = vector.shape_cast %12 : vector<1x512xi1> to vector<1x512xi1>
    %119 = vector.broadcast %118 : vector<1x512xi1> to vector<4x512xi1>
    %120 = vector.broadcast %cst_40 : f32 to vector<4x512xf32>
    %121 = arith.select %119, %117, %120 : vector<4x512xi1>, vector<4x512xf32>
    %c497_i32_41 = arith.constant 497 : i32
    %122 = tpu.dynamic_rotate %95 by %c497_i32_41 dim 1 : vector<4x512xf32>, i32 -> vector<4x512xf32>
    %cst_42 = arith.constant 0.000000e+00 : f32
    %123 = vector.shape_cast %15 : vector<1x512xi1> to vector<1x512xi1>
    %124 = vector.broadcast %123 : vector<1x512xi1> to vector<4x512xi1>
    %125 = vector.broadcast %cst_42 : f32 to vector<4x512xf32>
    %126 = arith.select %124, %122, %125 : vector<4x512xi1>, vector<4x512xf32>
    %c496_i32_43 = arith.constant 496 : i32
    %127 = tpu.dynamic_rotate %95 by %c496_i32_43 dim 1 : vector<4x512xf32>, i32 -> vector<4x512xf32>
    %cst_44 = arith.constant 0.000000e+00 : f32
    %128 = vector.shape_cast %8 : vector<1x512xi1> to vector<1x512xi1>
    %129 = vector.broadcast %128 : vector<1x512xi1> to vector<4x512xi1>
    %130 = vector.broadcast %cst_44 : f32 to vector<4x512xf32>
    %131 = arith.select %129, %127, %130 : vector<4x512xi1>, vector<4x512xf32>
    %c495_i32_45 = arith.constant 495 : i32
    %132 = tpu.dynamic_rotate %95 by %c495_i32_45 dim 1 : vector<4x512xf32>, i32 -> vector<4x512xf32>
    %cst_46 = arith.constant 0.000000e+00 : f32
    %133 = vector.shape_cast %16 : vector<1x512xi1> to vector<1x512xi1>
    %134 = vector.broadcast %133 : vector<1x512xi1> to vector<4x512xi1>
    %135 = vector.broadcast %cst_46 : f32 to vector<4x512xf32>
    %136 = arith.select %134, %132, %135 : vector<4x512xi1>, vector<4x512xf32>
    %137 = tpu.concatenate %101, %106, %111, %116, %95, %121, %126, %131, %136 in 0 : vector<4x512xf32>, vector<4x512xf32>, vector<4x512xf32>, vector<4x512xf32>, vector<4x512xf32>, vector<4x512xf32>, vector<4x512xf32>, vector<4x512xf32>, vector<4x512xf32> -> vector<36x512xf32>
    %cst_47 = arith.constant dense<0.000000e+00> : vector<4x512xf32>
    %138 = tpu.matmul %96, %137, %cst_47 {dimension_numbers = #tpu.dot_dimension_numbers<[1], [0], [0], [1], [0, 0, 1, 1], [], []>} : vector<4x36xf32>, vector<36x512xf32>, vector<4x512xf32> -> vector<4x512xf32>
    %c0_48 = arith.constant 0 : index
    %c0_49 = arith.constant 0 : index
    %139 = vector.load %arg5[%c0_48, %c0_49] : memref<4x1xf32, #tpu.memory_space<vmem>>, vector<4x1xf32>
    %c0_50 = arith.constant 0 : index
    %c0_51 = arith.constant 0 : index
    %140 = vector.load %arg6[%c0_50, %c0_51] : memref<4x1xf32, #tpu.memory_space<vmem>>, vector<4x1xf32>
    %cst_52 = arith.constant dense<0.000000e+00> : vector<4xf32>
    %141 = vector.multi_reduction <add>, %138, %cst_52 [1] : vector<4x512xf32> to vector<4xf32>
    %142 = vector.shape_cast %141 : vector<4xf32> to vector<4x1xf32>
    %143 = arith.mulf %138, %138 : vector<4x512xf32>
    %cst_53 = arith.constant dense<0.000000e+00> : vector<4xf32>
    %144 = vector.multi_reduction <add>, %143, %cst_53 [1] : vector<4x512xf32> to vector<4xf32>
    %145 = vector.shape_cast %144 : vector<4xf32> to vector<4x1xf32>
    %cst_54 = arith.constant 0.001953125 : f32
    %146 = vector.broadcast %cst_54 : f32 to vector<4x1xf32>
    %147 = arith.mulf %142, %146 : vector<4x1xf32>
    %cst_55 = arith.constant 0.001953125 : f32
    %148 = vector.broadcast %cst_55 : f32 to vector<4x1xf32>
    %149 = arith.mulf %145, %148 : vector<4x1xf32>
    %150 = arith.mulf %147, %147 : vector<4x1xf32>
    %151 = arith.subf %149, %150 : vector<4x1xf32>
    %cst_56 = arith.constant 9.99999974E-6 : f32
    %152 = vector.broadcast %cst_56 : f32 to vector<4x1xf32>
    %153 = arith.addf %151, %152 : vector<4x1xf32>
    %154 = math.rsqrt %153 : vector<4x1xf32>
    %155 = arith.mulf %139, %154 : vector<4x1xf32>
    %156 = arith.mulf %147, %155 : vector<4x1xf32>
    %157 = arith.subf %140, %156 : vector<4x1xf32>
    %158 = vector.broadcast %155 : vector<4x1xf32> to vector<4x512xf32>
    %159 = arith.mulf %138, %158 : vector<4x512xf32>
    %160 = vector.broadcast %157 : vector<4x1xf32> to vector<4x512xf32>
    %161 = arith.addf %159, %160 : vector<4x512xf32>
    %cst_57 = arith.constant 5.000000e-01 : f32
    %162 = vector.broadcast %cst_57 : f32 to vector<4x512xf32>
    %163 = arith.mulf %162, %161 : vector<4x512xf32>
    %cst_58 = arith.constant 0.707106769 : f32
    %164 = vector.broadcast %cst_58 : f32 to vector<4x512xf32>
    %165 = arith.mulf %161, %164 : vector<4x512xf32>
    %166 = math.erf %165 : vector<4x512xf32>
    %cst_59 = arith.constant 1.000000e+00 : f32
    %167 = vector.broadcast %cst_59 : f32 to vector<4x512xf32>
    %168 = arith.addf %167, %166 : vector<4x512xf32>
    %169 = arith.mulf %163, %168 : vector<4x512xf32>
    %170 = arith.addf %21, %169 : vector<4x512xf32>
    %cst_60 = arith.constant 0.70721358 : f32
    %171 = vector.broadcast %cst_60 : f32 to vector<4x512xf32>
    %172 = arith.mulf %170, %171 : vector<4x512xf32>
    %173 = vector.extract_strided_slice %172 {offsets = [0, 0], sizes = [4, 256], strides = [1, 1]} : vector<4x512xf32> to vector<4x256xf32>
    %c0_61 = arith.constant 0 : index
    %c0_62 = arith.constant 0 : index
    %c0_63 = arith.constant 0 : index
    %174 = vector.load %arg7[%c0_61, %c0_62, %c0_63] : memref<2x4x256xf32, #tpu.memory_space<vmem>>, vector<1x4x256xf32>
    %175 = vector.shape_cast %174 : vector<1x4x256xf32> to vector<4x256xf32>
    %176 = vector.shape_cast %173 : vector<4x256xf32> to vector<1x4x256xf32>
    tpu.vector_store %arg7[%c0_61, %c0_62, %c0_63], %176 {strides = array<i32>} : memref<2x4x256xf32, #tpu.memory_space<vmem>>, vector<1x4x256xf32>,
    %177 = vector.extract_strided_slice %172 {offsets = [0, 256], sizes = [4, 256], strides = [1, 1]} : vector<4x512xf32> to vector<4x256xf32>
    %c1_64 = arith.constant 1 : index
    %c0_65 = arith.constant 0 : index
    %c0_66 = arith.constant 0 : index
    %178 = vector.load %arg7[%c1_64, %c0_65, %c0_66] : memref<2x4x256xf32, #tpu.memory_space<vmem>>, vector<1x4x256xf32>
    %179 = vector.shape_cast %178 : vector<1x4x256xf32> to vector<4x256xf32>
    %180 = vector.shape_cast %177 : vector<4x256xf32> to vector<1x4x256xf32>
    tpu.vector_store %arg7[%c1_64, %c0_65, %c0_66], %180 {strides = array<i32>} : memref<2x4x256xf32, #tpu.memory_space<vmem>>, vector<1x4x256xf32>,
    return
  }
}

</mosaic_0001>

<bundles_post_ra>
// kernel: tpu_custom_call.1
= control target key start
LH: loop header
LB: loop body
LE: loop exit
PB: predicated region body
PF: predicated region fallthrough
CT: control target
= control target key end

     0   :  { %s1958_s0 = inlined_call_operand.vmem [shape: f32[2,4,256], index: 0, kind: input, shape index: {}]   ;;  %s1959_s1 = inlined_call_operand.vmem [shape: f32[4,36], index: 1, kind: input, shape index: {}]   ;;  %s1960_s2 = inlined_call_operand.vmem [shape: f32[4,1], index: 2, kind: input, shape index: {}]   ;;  %s1961_s3 = inlined_call_operand.vmem [shape: f32[4,1], index: 3, kind: input, shape index: {}]   ;;  %s1962_s4 = inlined_call_operand.vmem [shape: f32[4,36], index: 4, kind: input, shape index: {}]   ;;  %s1963_s5 = inlined_call_operand.vmem [shape: f32[4,1], index: 5, kind: input, shape index: {}]   ;;  %s1964_s6 = inlined_call_operand.vmem [shape: f32[4,1], index: 6, kind: input, shape index: {}]   ;;  %s1965_s7 = inlined_call_operand.hbm [shape: f32[2,4,256], index: 7, kind: output, shape index: {}]  }
   0x1   :  { %v1336_v0 = vld [vmem:[%s1958_s0 + $0x8] sm:$0xff]  ;;  %v1341_v1 = vld [vmem:[%s1958_s0] sm:$0xff] }
   0x2   :  { %12 = vsyncpa [#allocation3], 0  ;;  %v1345_v2 = vcombine.high %v1336_v0, %v1336_v0  ;;  %v1349_v3 = vcombine.high %v1341_v1, %v1341_v1  ;;  %s1280_s28 = smov 16   ;;  %s1281_s29 = smov 1   ;;  %v1287_v8 = vmov 0.0   ;;  %v27_v9 = vlaneseq }
   0x3   :  { %s1282_s30 = smov 15   ;;  %s1283_s8 = smov 17   ;;  %427 = vmatprep.mubr.f32.mxu0 %v1287_v8  ;;  %498 = vmatprep.mubr.f32.mxu1 %v1287_v8  ;;  %v1991_v28 = vmov 0  ;;  %vm1972_vm6 = vcmask 1043456   ;;  %v1997_v33 = vmov 0  ;;  %v1999_v34 = vmov 0 }
   0x4   :  { %v1100_v4 = vpack.i.bf16 %v1336_v0, %v1345_v2  ;;  %v1090_v5 = vpack.i.bf16 %v1349_v3, %v1341_v1  ;;  %v1135_v6 = vpack.i.bf16 %v1336_v0, %v1349_v3  ;;  %s1284_s9 = smov 112   ;;  %s1285_s10 = smov 127   ;;  %v1140_v7 = vpack.i.bf16 %v1345_v2, %v1341_v1 }
   0x5   :  { %s1286_s11 = smov 113   ;;  %s1288_s12 = smov 111   ;;  %v1383_v10 = vand.u32 127, %v27_v9  ;;  %v2001_v35 = vmov 0  ;;  %v2005_v43 = vmov 0  ;;  %v2009_v60 = vmov 0 }
   0x6   :  { %1101 = vrot.lane.b32.xlu1 %v1100_v4, %s1280_s28  ;;  %1091 = vrot.lane.b32.xlu0 %v1090_v5, %s1281_s29  ;;  %s1290_s23 = smov [#allocation2]  }
   0x7   :  { %v29_v11 = vadd.s32 128, %v1383_v10  ;;  %v1387_v12 = vadd.s32 384, %v1383_v10  ;;  %v30_v13 = vadd.s32 256, %v1383_v10  ;;  %vm1967_vm0 = vcmp.lt.s32.totalorder %v1383_v10, 1  ;;  %s1021_s24 = sshll.u32 %s1290_s23, 4  ;;  %s1022_s24 = int_to_ptr.vmem [resolvable:$true] %s1021_s24 }
   0x8   :  { %vm1966_vm1 = vcmp.lt.s32.totalorder %v1383_v10, 16  ;;  %vm1971_vm2 = vcmp.lt.s32.totalorder %v1383_v10, 17  ;;  %v36_v17 = vand.u32 15, %v1383_v10  ;;  %v32_v19 = vand.u32 255, %v1383_v10  ;;  %s1256_s25 = scalar_lea.vmem %s1022_s24, 256  ;;  %p1261_p1 = scmp.lt.s32.totalorder %s1022_s24, %s1022_s24 }
   0x9   :  { %v37_v14 = vand.u32 15, %v29_v11  ;;  %v39_v18 = vand.u32 15, %v1387_v12  ;;  %v33_v24 = vand.u32 255, %v29_v11  ;;  %vm1968_vm3 = vcmp.lt.s32.totalorder %v1383_v10, 15  ;;  %p1257_p0 = scmp.ne.s32.totalorder %s1022_s24, %s1256_s25  ;;  %p1262_p2 = scmp.lt.s32.totalorder %s1256_s25, %s1256_s25 }
   0xa   :  { %1106 = vrot.lane.b32.xlu1 %v1100_v4, %s1281_s29  ;;  %1096 = vrot.lane.b32.xlu0 %v1090_v5, %s1280_s28  ;;  %v38_v25 = vand.u32 15, %v30_v13  ;;  %v34_v26 = vand.u32 255, %v30_v13  ;;  %vm1407_vm7 = vcmp.le.s32.totalorder %v36_v17, 14  ;;  %vm1411_vm8 = vcmp.ge.s32.totalorder %v32_v19, 16 }
   0xb   :  { %vm1399_vm4 = vcmp.le.s32.totalorder %v37_v14, 14  ;;  %vm1403_vm5 = vcmp.ge.s32.totalorder %v37_v14, 1  ;;  %v1998_v33 = vsel %vm1411_vm8, 4294967295, %v1997_v33  ;;  %vm1415_vm9 = vcmp.ge.s32.totalorder %v36_v17, 1  ;;  %p1263_p3 = por %p1262_p2, %p1261_p1 }
   0xc   :  { %v1992_v28 = vsel %vm1399_vm4, 4294967295, %v1991_v28  ;;  %v2000_v34 = vsel %vm1415_vm9, 4294967295, %v1999_v34  ;;  %vm1419_vm10 = vcmp.ge.s32.totalorder %v39_v18, 1  ;;  %vm1429_vm11 = vcmp.ge.s32.totalorder %v34_v26, 16 }
   0xd   :  { %v2002_v35 = vsel %vm1419_vm10, 4294967295, %v2001_v35  ;;  %vm1433_vm12 = vcmp.ge.s32.totalorder %v38_v25, 1  ;;  %v35_v44 = vand.u32 255, %v1387_v12  ;;  %vm1444_vm13 = vcmp.le.s32.totalorder %v39_v18, 14  ;;  %p1264_p4 = pnand %p1263_p3, %p1257_p0 }
   0xe   :  { %1116 = vrot.lane.b32.xlu1 %v1090_v5, %s1282_s30  ;;  %1111 = vrot.lane.b32.xlu0 %v1090_v5, %s1283_s8  ;;  %v2006_v43 = vsel %vm1433_vm12, 4294967295, %v2005_v43  ;;  %vm1467_vm14 = vcmp.lt.s32.totalorder %v33_v24, 240  ;;  %vm1471_vm15 = vcmp.le.s32.totalorder %v38_v25, 14 }
   0xf   :  { %v2010_v60 = vsel %vm1467_vm14, 4294967295, %v2009_v60 }
  0x12   :  { %1126 = vrot.lane.b32.xlu1 %v1100_v4, %s1282_s30  ;;  %1121 = vrot.lane.b32.xlu0 %v1100_v4, %s1283_s8 }
  0x16   :  { %1136 = vrot.lane.b32.xlu1 %v1135_v6, %s1284_s9  ;;  %1131 = vrot.lane.b32.xlu0 %v1135_v6, %s1285_s10 }
  0x1a   :  { %1146 = vrot.lane.b32.xlu1 %v1135_v6, %s1286_s11  ;;  %1141 = vrot.lane.b32.xlu0 %v1140_v7, %s1285_s10 }
  0x1e   :  { %1156 = vrot.lane.b32.xlu1 %v1140_v7, %s1286_s11  ;;  %1151 = vrot.lane.b32.xlu0 %v1140_v7, %s1284_s9 }
  0x22   :  { %261 = vrot.lane.b32.xlu1 %v1336_v0, %s1288_s12  ;;  %259 = vrot.lane.b32.xlu0 %v1349_v3, %s1288_s12 }
  0x26   :  { %263 = vrot.lane.b32.xlu1 %v1345_v2, %s1288_s12  ;;  %257 = vrot.lane.b32.xlu0 %v1341_v1, %s1288_s12 }
  0x78   :  { %v1102_v15 = vpop.permute.xlu1 %1101  ;;  %v1092_v16 = vpop.permute.xlu0 %1091 }
  0x79   :  { %v1104_v20 = vunpack.i.h.bf16 %v1102_v15  ;;  %v1103_v21 = vunpack.i.l.bf16 %v1102_v15  ;;  %v1094_v22 = vunpack.i.h.bf16 %v1092_v16  ;;  %v1093_v23 = vunpack.i.l.bf16 %v1092_v16 }
  0x7b   :  { %v168_v27 = vsel %vm1967_vm0, %v1093_v23, %v1094_v22  ;;  %v1425_v36 = vsel %vm1966_vm1, %v1104_v20, %v1103_v21 }
  0x7c   :  { %v1107_v31 = vpop.permute.xlu1 %1106  ;;  %v1097_v32 = vpop.permute.xlu0 %1096  ;;  %v179_v41 = vsel %vm1403_vm5, %v168_v27, 0.0  ;;  %v289_v49 = vrot.slane %v1425_v36, 4 }
  0x7d   :  { %v1109_v37 = vunpack.i.h.bf16 %v1107_v31  ;;  %v1108_v38 = vunpack.i.l.bf16 %v1107_v31  ;;  %v1099_v39 = vunpack.i.h.bf16 %v1097_v32  ;;  %v1098_v40 = vunpack.i.l.bf16 %v1097_v32 }
  0x7e   :  { %v299_v4 = vrot.slane %v179_v41, 4 }
  0x7f   :  { %v166_v45 = vsel %vm1967_vm0, %v1109_v37, %v1108_v38  ;;  %v169_v46 = vsel %vm1967_vm0, %v1108_v38, %v1093_v23  ;;  %v117_v47 = vsel %vm1966_vm1, %v1099_v39, %v1104_v20  ;;  %v119_v50 = vsel %vm1966_vm1, %v1103_v21, %v1098_v40 }
  0x80   :  { %v1451_v51 = vpop.permute.xlu1 %1116  ;;  %v1453_v52 = vpop.permute.xlu0 %1111  ;;  %v118_v53 = vsel %vm1966_vm1, %v1098_v40, %v1099_v39  ;;  %v178_v54 = vsel %vm1415_vm9, %v169_v46, 0.0  ;;  %v181_v55 = vsel %vm1419_vm10, %v166_v45, 0.0  ;;  %v167_v62 = vsel %vm1967_vm0, %v1094_v22, %v1109_v37  ;;  %vm1969_vm0 = vmand %vm1411_vm8, %vm1407_vm7 }
  0x81   :  { %v1119_v56 = vunpack.i.h.bf16 %v1451_v51  ;;  %v1118_v57 = vunpack.i.l.bf16 %v1451_v51  ;;  %v1114_v58 = vunpack.i.h.bf16 %v1453_v52  ;;  %v1113_v59 = vunpack.i.l.bf16 %v1453_v52 }
  0x82   :  { %v287_v63 = vrot.slane %v118_v53, 4  ;;  %v128_v5 = vsel %vm1411_vm8, %v119_v50, 0.0  ;;  %v298_v9 = vrot.slane %v178_v54, 4  ;;  %v130_v11 = vsel %vm1429_vm11, %v117_v47, 0.0 }
  0x83   :  { %v93_v6 = vsel %vm1971_vm2, %v1113_v59, %v1114_v58  ;;  %v143_v7 = vsel %vm1968_vm3, %v1118_v57, %v1119_v56  ;;  %v286_v17 = vrot.slane %v128_v5, 4  ;;  %v301_v18 = vrot.slane %v181_v55, 4  ;;  %vm1970_vm3 = vmand %vm1411_vm8, %vm1415_vm9 }
  0x84   :  { %v1127_v13 = vpop.permute.xlu1 %1126  ;;  %v1122_v14 = vpop.permute.xlu0 %1121  ;;  %v104_v15 = vsel %vm1403_vm5, %v93_v6, 0.0  ;;  %v154_v16 = vsel %vm1399_vm4, %v143_v7, 0.0  ;;  %v180_v25 = vsel %vm1433_vm12, %v167_v62, 0.0  ;;  %v288_v26 = vrot.slane %v130_v11, 4 }
  0x85   :  { %v1129_v19 = vunpack.i.h.bf16 %v1127_v13  ;;  %v1128_v20 = vunpack.i.l.bf16 %v1127_v13  ;;  %v1124_v21 = vunpack.i.h.bf16 %v1122_v14  ;;  %v1123_v22 = vunpack.i.l.bf16 %v1122_v14 }
  0x86   :  { %v332_v23 = vsel %vm1972_vm6, %v104_v15, %v287_v63  ;;  %v336_v24 = vsel %vm1972_vm6, %v154_v16, %v299_v4  ;;  %vm2013_vm1 = vcmp.lt.s32.totalorder %v1383_v10, 15  ;;  %v300_v15 = vrot.slane %v180_v25, 4 }
  0x87   :  { %v1045_v27 = vpack.c.bf16 %v336_v24, %v332_v23  ;;  %v94_v31 = vsel %vm1971_vm2, %v1123_v22, %v1113_v59  ;;  %v144_v32 = vsel %vm2013_vm1, %v1128_v20, %v1118_v57  ;;  %v91_v36 = vsel %vm1971_vm2, %v1124_v21, %v1123_v22  ;;  %vm1977_vm2 = vmand %vm1429_vm11, %vm1433_vm12 }
  0x88   :  { %v1510_v37 = vpop.permute.xlu1 %1136  ;;  %v1132_v38 = vpop.permute.xlu0 %1131  ;;  %v103_v39 = vsel %vm1970_vm3, %v94_v31, 0.0  ;;  %v153_v40 = vsel %vm1969_vm0, %v144_v32, 0.0  ;;  %v106_v41 = vsel %vm1419_vm10, %v91_v36, 0.0  ;;  %v141_v45 = vsel %vm2013_vm1, %v1129_v19, %v1128_v20 }
  0x89   :  { %v1139_v46 = vunpack.i.h.bf16 %v1510_v37  ;;  %v1138_v47 = vunpack.i.l.bf16 %v1510_v37  ;;  %v1134_v50 = vunpack.i.h.bf16 %v1132_v38  ;;  %v1133_v52 = vunpack.i.l.bf16 %v1132_v38  ;;  %1046 = vmatprep.subr.bf16.mxu0 %v1045_v27 }
  0x8a   :  { %v331_v53 = vsel %vm1972_vm6, %v103_v39, %v286_v17  ;;  %v335_v54 = vsel %vm1972_vm6, %v153_v40, %v298_v9  ;;  %v156_v55 = vsel %vm1444_vm13, %v141_v45, 0.0  ;;  %v334_v57 = vsel %vm1972_vm6, %v106_v41, %v289_v49 }
  0x8b   :  { %vm1535_vm0 = vcmp.lt.s32.totalorder %v35_v44, 240  ;;  %vm2016_vm1 = vcmp.lt.s32.totalorder %v1383_v10, 112  ;;  %vm2017_vm3 = vcmp.lt.s32.totalorder %v1383_v10, 127  ;;  %v1047_v4 = vpack.c.bf16 %v335_v54, %v331_v53 }
  0x8c   :  { %v242_v62 = vsel %vm2016_vm1, %v1138_v47, %v1139_v46  ;;  %v192_v63 = vsel %vm2017_vm3, %v1133_v52, %v1134_v50  ;;  %v338_v5 = vsel %vm1972_vm6, %v156_v55, %v301_v18  ;;  %v1147_v49 = vpop.permute.xlu1 %1146  ;;  %v1142_v6 = vpop.permute.xlu0 %1141  ;;  %vm1980_vm3 = vmand %vm1429_vm11, %vm1471_vm15  ;;  %vm2018_vm1 = vcmp.lt.s32.totalorder %v1383_v10, 17 }
  0x8d   :  { %v254_v12 = vsel %vm1467_vm14, %v242_v62, 0.0  ;;  %v204_v44 = vsel %vm1399_vm4, %v192_v63, 0.0  ;;  %v1053_v7 = vpack.c.bf16 %v338_v5, %v334_v57  ;;  %v92_v9 = vsel %vm2018_vm1, %v1114_v58, %v1124_v21  ;;  %1048 = vmatpush1.bf16.msra.mxu0 %v1047_v4 }
  0x8e   :  { %v311_v11 = vrot.slane %v204_v44, 4  ;;  %v1149_v13 = vunpack.i.h.bf16 %v1147_v49  ;;  %v1148_v14 = vunpack.i.l.bf16 %v1147_v49  ;;  %v1144_v16 = vunpack.i.h.bf16 %v1142_v6 }
  0x8f   :  { %v1143_v17 = vunpack.i.l.bf16 %v1142_v6  ;;  %1054 = vmatprep.subr.bf16.mxu1 %v1053_v7  ;;  %v105_v18 = vsel %vm1977_vm2, %v92_v9, 0.0  ;;  %vm2019_vm6 = vcmp.lt.s32.totalorder %v1383_v10, 15  ;;  %v323_v58 = vrot.slane %v254_v12, 4 }
  0x90   :  { %v142_v20 = vsel %vm2019_vm6, %v1119_v56, %v1129_v19  ;;  %vm2020_vm1 = vcmp.lt.s32.totalorder %v1383_v10, 113  ;;  %vm2021_vm8 = vcmask 1043456   ;;  %vm2022_vm12 = vcmp.lt.s32.totalorder %v1383_v10, 127  ;;  %v1157_v25 = vpop.permute.xlu1 %1156  ;;  %v1152_v27 = vpop.permute.xlu0 %1151 }
  0x91   :  { %v217_v21 = vsel %vm2020_vm1, %v1148_v14, %v1149_v13  ;;  %v155_v22 = vsel %vm1980_vm3, %v142_v20, 0.0  ;;  %v333_v23 = vsel %vm2021_vm8, %v105_v18, %v288_v26  ;;  %v191_v24 = vsel %vm2022_vm12, %v1134_v50, %v1144_v16  ;;  %vm2023_vm2 = vmmov %vm2022_vm12 }
  0x92   :  { %v193_v51 = vsel %vm2023_vm2, %v1143_v17, %v1133_v52  ;;  %vm2024_vm6 = vmmov %vm2023_vm2  ;;  %v205_v31 = vsel %vm1471_vm15, %v191_v24, 0.0  ;;  %v1159_v39 = vunpack.i.h.bf16 %v1157_v25  ;;  %vm1987_vm2 = vcmp.lt.s32.totalorder %v1383_v10, 111 }
  0x93   :  { %v194_v56 = vsel %vm2024_vm6, %v1144_v16, %v1143_v17  ;;  %vm2025_vm9 = vmmov %vm2021_vm8  ;;  %v203_v26 = vsel %vm1407_vm7, %v193_v51, 0.0  ;;  %v340_v40 = vsel %vm2021_vm8, %v1349_v3, %v311_v11  ;;  %v1158_v41 = vunpack.i.l.bf16 %v1157_v25 }
  0x94   :  { %v337_v19 = vsel %vm2025_vm9, %v155_v22, %v300_v15  ;;  %vm1981_vm1 = vmand %vm1467_vm14, %vm1403_vm5  ;;  %v206_v32 = vsel %vm1444_vm13, %v194_v56, 0.0  ;;  %v310_v38 = vrot.slane %v203_v26, 4  ;;  %v1154_v45 = vunpack.i.h.bf16 %v1152_v27  ;;  %v262_v57 = vpop.permute.xlu1 %261  ;;  %v260_v62 = vpop.permute.xlu0 %259 }
  0x95   :  { %v1055_v36 = vpack.c.bf16 %v337_v19, %v333_v23  ;;  %v1153_v50 = vunpack.i.l.bf16 %v1152_v27  ;;  %v229_v52 = vsel %vm1981_vm1, %v217_v21, 0.0  ;;  %v312_v53 = vrot.slane %v205_v31, 4  ;;  %vm2027_vm12 = vmmov %vm2021_vm8  ;;  %v81_v27 = vld [vmem:[%s1959_s1] sm:$0xf] }
  0x96   :  { %v313_v54 = vrot.slane %v206_v32, 4  ;;  %vm2026_vm9 = vcmp.lt.s32.totalorder %v1383_v10, 113  ;;  %v344_v63 = vsel %vm2027_vm12, %v229_v52, %v323_v58  ;;  %vm2030_vm3 = vcmp.lt.s32.totalorder %v1383_v10, 112 }
  0x97   :  { %1056 = vmatpush1.bf16.msra.mxu1 %v1055_v36  ;;  %v216_v55 = vsel %vm2026_vm9, %v1149_v13, %v1159_v39  ;;  %vm2028_vm6 = vmmov %vm2026_vm9  ;;  %v241_v12 = vsel %vm2030_vm3, %v1139_v46, %v1154_v45  ;;  %v267_v37 = vsel %vm1987_vm2, %v260_v62, %v262_v57  ;;  %v1049_v9 = vpack.c.bf16 %v344_v63, %v340_v40 }
  0x98   :  { %v218_v4 = vsel %vm2028_vm6, %v1158_v41, %v1148_v14  ;;  %vm2029_vm8 = vmmov %vm2028_vm6  ;;  %v324_v7 = vrot.slane %v241_v12, 4  ;;  %v264_v14 = vpop.permute.xlu1 %263  ;;  %v258_v15 = vpop.permute.xlu0 %257 }
  0x99   :  { %v219_v5 = vsel %vm2029_vm8, %v1159_v39, %v1158_v41  ;;  %vm2031_vm1 = vmmov %vm2030_vm3  ;;  %vm2033_vm3 = vcmask 1043456   ;;  %1050 = vmatprep.subr.bf16.mxu0 %v1049_v9  ;;  %v269_v20 = vsel %vm1987_vm2, %v264_v14, %v258_v15  ;;  %v268_v23 = vsel %vm1987_vm2, %v258_v15, %v260_v62  ;;  %v505_v15 = vld [vmem:[%s1960_s2] sm:$0xf] }
  0x9a   :  { %v243_v44 = vsel %vm2031_vm1, %v1153_v50, %v1138_v47  ;;  %vm1982_vm9 = vmand %vm1535_vm0, %vm1419_vm10  ;;  %v339_v46 = vsel %vm2033_vm3, %v1341_v1, %v310_v38  ;;  %v278_v26 = vsel %vm1407_vm7, %v268_v23, 0.0 }
  0x9b   :  { %vm2032_vm12 = vmmov %vm2031_vm1  ;;  %v322_v6 = vrot.slane %v243_v44, 4  ;;  %vm2034_vm1 = vnez %v2000_v34  ;;  %v231_v17 = vsel %vm1982_vm9, %v219_v5, 0.0 }
  0x9c   :  { %v244_v49 = vsel %vm2032_vm12, %v1154_v45, %v1153_v50  ;;  %vm1983_vm6 = vmand %vm1467_vm14, %vm1399_vm4  ;;  %v228_v11 = vsel %vm2034_vm1, %v218_v4, 0.0  ;;  %vm2036_vm12 = vnez %v2006_v43 }
  0x9d   :  { %v256_v47 = vsel %vm1535_vm0, %v244_v49, 0.0  ;;  %vm2035_vm8 = vmmov %vm2033_vm3  ;;  %v230_v1 = vsel %vm2036_vm12, %v216_v55, 0.0  ;;  %v279_v18 = vsel %vm1983_vm6, %v267_v37, 0.0  ;;  %v1289_v37 = vmov 0  }
  0x9e   :  { %v325_v13 = vrot.slane %v256_v47, 4  ;;  %v343_v16 = vsel %vm2035_vm8, %v228_v11, %v322_v6  ;;  %vm1986_vm3 = vmand %vm1535_vm0, %vm1444_vm13  ;;  %v342_v21 = vsel %vm2035_vm8, %v1345_v2, %v313_v54  ;;  %1160 = vset.pattern.permute.xlu0 %v1289_v37  ;;  %1161 = vset.pattern.permute.xlu1 %v1289_v37 }
  0x9f   :  { %v1051_v58 = vpack.c.bf16 %v343_v16, %v339_v46  ;;  %vm2037_vm9 = vmmov %vm2035_vm8  ;;  %v281_v19 = vsel %vm1986_vm3, %v269_v20, 0.0 }
  0xa0   :  { %v346_v22 = vsel %vm2037_vm9, %v231_v17, %v325_v13  ;;  %vm2038_vm6 = vmmov %vm2035_vm8  ;;  %vm1988_vm9 = vcmask 293888  }
  0xa1   :  { %1052 = vmatpush1.bf16.msra.mxu0 %v1051_v58  ;;  %v1057_v24 = vpack.c.bf16 %v346_v22, %v342_v21  ;;  %v341_v51 = vsel %vm2038_vm6, %v1336_v0, %v312_v53  ;;  %vm2039_vm14 = vmmov %vm2038_vm6  ;;  %v266_v0 = vsel %vm1987_vm2, %v262_v57, %v264_v14 }
  0xa2   :  { %v345_v56 = vsel %vm2039_vm14, %v230_v1, %v324_v7  ;;  %vm2040_vm12 = vmmov %vm2038_vm6  ;;  %v280_v31 = vsel %vm1471_vm15, %v266_v0, 0.0  ;;  %v506_v1 = vld [vmem:[%s1961_s3] sm:$0xf] }
  0xa3   :  { %1033 = vmatprep.subr.msk.mxu0 %vm2040_vm12, %v279_v18  ;;  %v1059_v25 = vpack.c.bf16 %v345_v56, %v341_v51  ;;  %1058 = vmatprep.subr.bf16.mxu1 %v1057_v24  ;;  %vm2041_vm14 = vmmov %vm2038_vm6 }
  0xa4   :  { %vm2042_vm12 = vmmov %vm2038_vm6 }
  0xa5   :  { %1060 = vmatpush1.bf16.msra.mxu1 %v1059_v25  ;;  %1034 = vmatpush1.msk.msra.mxu0 %vm2041_vm14, %v278_v26  ;;  %vm2043_vm8 = vmmov %vm2038_vm6 }
  0xa6   :  { %1036 = vmatprep.subr.msk.mxu1 %vm2038_vm6, %v281_v19  ;;  %1035 = vmatmul.mubr.msk.f32.vlgmr.msra.gmra.mrb[0].mxu0 %vm1988_vm9, %v81_v27  ;;  %vm2044_vm14 = vmmov %vm2038_vm6 }
  0xa7   :  { %848 = vmatprep.mubr.f32.mxu0 %v1287_v8  ;;  %vm2045_vm3 = vmmov %vm2038_vm6 }
  0xa8   :  { %vm2046_vm2 = vmmov %vm2045_vm3 }
  0xa9   :  { %1037 = vmatpush1.msk.msra.mxu1 %vm2042_vm12, %v280_v31  ;;  %vm2047_vm12 = vmmov %vm2046_vm2 }
  0xaa   :  { %1038 = vmatmul.mubr.msk.f32.vlgmr.msra.gmra.mrb[0].mxu1 %vm1988_vm9, %v81_v27  ;;  %vm2073_vm9 = vcmp.lt.s32.totalorder %v1383_v10, 15 }
  0xab   :  { %919 = vmatprep.mubr.f32.mxu1 %v1287_v8 }
 0x179   :  { %v429_v32 = vpop.f32.mrb[0].mxu0 }
 0x17a   :  { %v507_v36 = vsel %vm2043_vm8, %v429_v32, 0.0  ;;  %v516_v38 = vmul.f32 %v429_v32, %v429_v32  ;;  %v431_v39 = vpop.f32.mrb[1].mxu0  ;;  %vm2048_vm8 = vmmov %vm2046_vm2 }
 0x17b   :  { %v508_v40 = vsel %vm2044_vm14, %v431_v39, 0.0  ;;  %v517_v41 = vmul.f32 %v431_v39, %v431_v39  ;;  %vm2049_vm14 = vmmov %vm2046_vm2 }
 0x17c   :  { %v520_v45 = vsel %vm2038_vm6, %v516_v38, 0.0  ;;  %v509_v50 = vadd.f32 %v508_v40, %v507_v36  ;;  %vm2052_vm6 = vcmp.lt.s32.totalorder %v1383_v10, 16 }
 0x17d   :  { %v500_v52 = vpop.f32.mrb[0].mxu1  ;;  %v521_v53 = vsel %vm2045_vm3, %v517_v41, 0.0  ;;  %vm2051_vm3 = vcmp.lt.s32.totalorder %v1383_v10, 17 }
 0x17e   :  { %v510_v54 = vsel %vm2046_vm2, %v500_v52, 0.0  ;;  %v518_v55 = vmul.f32 %v500_v52, %v500_v52  ;;  %v502_v57 = vpop.f32.mrb[1].mxu1  ;;  %v522_v63 = vadd.f32 %v521_v53, %v520_v45  ;;  %vm2050_vm2 = vcmp.lt.s32.totalorder %v1383_v10, 1 }
 0x17f   :  { %v519_v62 = vmul.f32 %v502_v57, %v502_v57  ;;  %v511_v8 = vadd.f32 %v510_v54, %v509_v50  ;;  %v512_v4 = vsel %vm2047_vm12, %v502_v57, 0.0  ;;  %vm2053_vm12 = vmmov %vm2052_vm6 }
 0x180   :  { %v523_v5 = vsel %vm2048_vm8, %v518_v55, 0.0  ;;  %vm2054_vm8 = vmmov %vm2052_vm6 }
 0x181   :  { %v513_v12 = vadd.f32 %v512_v4, %v511_v8  ;;  %v524_v44 = vadd.f32 %v523_v5, %v522_v63  ;;  %v525_v49 = vsel %vm2049_vm14, %v519_v62, 0.0  ;;  %vm2055_vm14 = vcmp.lt.s32.totalorder %v1383_v10, 127 }
 0x183   :  { %514 = vadd.xlane.f32.xlu0 %v513_v12  ;;  %v526_v6 = vadd.f32 %v525_v49, %v524_v44 }
 0x185   :  { %527 = vadd.xlane.f32.xlu1 %v526_v6 }
 0x210   :  { %v515_v46 = vpop.xlane.xlu0 %514 }
 0x211   :  { %v529_v47 = vmul.f32 0.001953125, %v515_v46 }
 0x212   :  { %v528_v7 = vpop.xlane.xlu1 %527 }
 0x213   :  { %v531_v9 = vmul.f32 %v529_v47, %v529_v47  ;;  %v530_v11 = vmul.f32 0.001953125, %v528_v7 }
 0x215   :  { %v532_v13 = vsub.f32 %v530_v11, %v531_v9 }
 0x217   :  { %v533_v14 = vadd.f32 1e-05, %v532_v13 }
 0x219   :  { %1234 = vrsqrt.f32 %v533_v14 }
 0x223   :  { %v1235_v16 = vpop.eup %1234 }
 0x224   :  { %v535_v17 = vmul.f32 %v1235_v16, %v505_v15 }
 0x226   :  { %540 = vperm.xlu0 %1160, %v535_v17   ;;  %v536_v18 = vmul.f32 %v535_v17, %v529_v47 }
 0x228   :  { %v537_v20 = vsub.f32 %v506_v1, %v536_v18 }
 0x22a   :  { %549 = vperm.xlu1 %1161, %v537_v20  }
 0x2a5   :  { %v541_v58 = vpop.permute.xlu0 %540 }
 0x2a6   :  { %v543_v21 = vmul.f32 %v541_v58, %v429_v32  ;;  %v544_v22 = vmul.f32 %v541_v58, %v431_v39  ;;  %v545_v23 = vmul.f32 %v541_v58, %v500_v52  ;;  %v546_v24 = vmul.f32 %v541_v58, %v502_v57 }
 0x2a9   :  { %v550_v51 = vpop.permute.xlu1 %549 }
 0x2aa   :  { %v552_v56 = vadd.f32 %v550_v51, %v543_v21  ;;  %v553_v19 = vadd.f32 %v550_v51, %v544_v22  ;;  %v554_v25 = vadd.f32 %v550_v51, %v545_v23  ;;  %v555_v27 = vadd.f32 %v550_v51, %v546_v24 }
 0x2ac   :  { %v560_v0 = vmul.f32 0.70710677, %v552_v56  ;;  %v561_v26 = vmul.f32 0.70710677, %v553_v19  ;;  %v562_v31 = vmul.f32 0.70710677, %v554_v25 }
 0x2ad   :  { %v563_v36 = vmul.f32 0.70710677, %v555_v27  ;;  %v556_v41 = vmul.f32 0.5, %v552_v56  ;;  %v557_v45 = vmul.f32 0.5, %v553_v19  ;;  %v558_v53 = vmul.f32 0.5, %v554_v25 }
 0x2ae   :  { %1236 = verf.f32 %v560_v0  ;;  %v559_v57 = vmul.f32 0.5, %v555_v27 }
 0x2af   :  { %1238 = verf.f32 %v561_v26 }
 0x2b0   :  { %1240 = verf.f32 %v562_v31 }
 0x2b1   :  { %1242 = verf.f32 %v563_v36 }
 0x2b8   :  { %v1237_v38 = vpop.eup %1236 }
 0x2b9   :  { %v1239_v40 = vpop.eup %1238  ;;  %v568_v32 = vadd.f32 1.0, %v1237_v38 }
 0x2ba   :  { %v1241_v39 = vpop.eup %1240  ;;  %v569_v50 = vadd.f32 1.0, %v1239_v40 }
 0x2bb   :  { %v1243_v52 = vpop.eup %1242  ;;  %v570_v54 = vadd.f32 1.0, %v1241_v39  ;;  %v1700_v55 = vmul.f32 %v568_v32, %v556_v41 }
 0x2bc   :  { %v571_v62 = vadd.f32 1.0, %v1243_v52  ;;  %v1702_v8 = vmul.f32 %v569_v50, %v557_v45 }
 0x2bd   :  { %v1704_v63 = vmul.f32 %v570_v54, %v558_v53 }
 0x2be   :  { %v1706_v4 = vmul.f32 %v571_v62, %v559_v57  ;;  %v1162_v5 = vpack.i.bf16 %v1702_v8, %v1700_v55 }
 0x2bf   :  { %v1202_v44 = vpack.i.bf16 %v1704_v63, %v1702_v8 }
 0x2c0   :  { %v1192_v12 = vpack.i.bf16 %v1704_v63, %v1706_v4  ;;  %1163 = vrot.lane.b32.xlu1 %v1162_v5, %s1281_s29  ;;  %v1212_v49 = vpack.i.bf16 %v1706_v4, %v1700_v55 }
 0x2c2   :  { %1193 = vrot.lane.b32.xlu0 %v1192_v12, %s1283_s8 }
 0x2c4   :  { %1168 = vrot.lane.b32.xlu1 %v1162_v5, %s1280_s28 }
 0x2c6   :  { %1203 = vrot.lane.b32.xlu0 %v1202_v44, %s1285_s10 }
 0x2c8   :  { %1173 = vrot.lane.b32.xlu1 %v1192_v12, %s1280_s28 }
 0x2ca   :  { %1213 = vrot.lane.b32.xlu0 %v1212_v49, %s1285_s10 }
 0x2cc   :  { %1178 = vrot.lane.b32.xlu1 %v1192_v12, %s1281_s29 }
 0x2ce   :  { %1223 = vrot.lane.b32.xlu0 %v1212_v49, %s1284_s9 }
 0x2d0   :  { %1183 = vrot.lane.b32.xlu1 %v1162_v5, %s1283_s8 }
 0x2d2   :  { %691 = vrot.lane.b32.xlu0 %v1702_v8, %s1288_s12 }
 0x2d4   :  { %1188 = vrot.lane.b32.xlu1 %v1162_v5, %s1282_s30 }
 0x2d6   :  { %689 = vrot.lane.b32.xlu0 %v1700_v55, %s1288_s12 }
 0x2d8   :  { %1198 = vrot.lane.b32.xlu1 %v1192_v12, %s1282_s30 }
 0x2dc   :  { %1208 = vrot.lane.b32.xlu1 %v1202_v44, %s1284_s9 }
 0x2e0   :  { %1218 = vrot.lane.b32.xlu1 %v1202_v44, %s1286_s11 }
 0x2e4   :  { %1228 = vrot.lane.b32.xlu1 %v1212_v49, %s1286_s11 }
 0x2e8   :  { %693 = vrot.lane.b32.xlu1 %v1704_v63, %s1288_s12 }
 0x2ec   :  { %695 = vrot.lane.b32.xlu1 %v1706_v4, %s1288_s12 }
 0x332   :  { %v1164_v6 = vpop.permute.xlu1 %1163 }
 0x333   :  { %v1166_v47 = vunpack.i.h.bf16 %v1164_v6  ;;  %v1165_v7 = vunpack.i.l.bf16 %v1164_v6 }
 0x334   :  { %v1194_v37 = vpop.permute.xlu0 %1193 }
 0x335   :  { %v635_v13 = vsel %vm2050_vm2, %v1165_v7, %v1166_v47  ;;  %v1196_v14 = vunpack.i.h.bf16 %v1194_v37  ;;  %v1195_v15 = vunpack.i.l.bf16 %v1194_v37  ;;  %vm2056_vm2 = vmmov %vm2055_vm14 }
 0x336   :  { %v1169_v46 = vpop.permute.xlu1 %1168  ;;  %v638_v58 = vsel %vm1403_vm5, %v635_v13, 0.0 }
 0x337   :  { %v1171_v1 = vunpack.i.h.bf16 %v1169_v46  ;;  %v1170_v18 = vunpack.i.l.bf16 %v1169_v46  ;;  %v585_v51 = vsel %vm2051_vm3, %v1196_v14, %v1195_v15  ;;  %v722_v19 = vrot.slane %v638_v58, 4  ;;  %vm2057_vm3 = vmmov %vm2052_vm6 }
 0x338   :  { %v1204_v9 = vpop.permute.xlu0 %1203  ;;  %v592_v54 = vsel %vm1419_vm10, %v585_v51, 0.0 }
 0x339   :  { %v1206_v21 = vunpack.i.h.bf16 %v1204_v9  ;;  %v1205_v22 = vunpack.i.l.bf16 %v1204_v9  ;;  %v603_v25 = vsel %vm2053_vm12, %v1170_v18, %v1171_v1  ;;  %vm2059_vm12 = vcmp.lt.s32.totalorder %v1383_v10, 1 }
 0x33a   :  { %v1174_v11 = vpop.permute.xlu1 %1173  ;;  %v710_v50 = vrot.slane %v603_v25, 4 }
 0x33b   :  { %v1175_v17 = vunpack.i.l.bf16 %v1174_v11  ;;  %v1176_v20 = vunpack.i.h.bf16 %v1174_v11  ;;  %v1752_v26 = vsel %vm2055_vm14, %v1205_v22, %v1206_v21  ;;  %vm2061_vm14 = vmmov %vm2059_vm12 }
 0x33c   :  { %v1214_v16 = vpop.permute.xlu0 %1213  ;;  %v654_v57 = vsel %vm1399_vm4, %v1752_v26, 0.0 }
 0x33d   :  { %v1215_v23 = vunpack.i.l.bf16 %v1214_v16  ;;  %v604_v56 = vsel %vm2052_vm6, %v1175_v17, %v1170_v18  ;;  %v1216_v27 = vunpack.i.h.bf16 %v1214_v16  ;;  %v602_v0 = vsel %vm2054_vm8, %v1171_v1, %v1176_v20  ;;  %vm2060_vm8 = vmmov %vm2056_vm2 }
 0x33e   :  { %v1179_v24 = vpop.permute.xlu1 %1178  ;;  %v601_v36 = vsel %vm2057_vm3, %v1176_v20, %v1175_v17  ;;  %vm2058_vm6 = vnez %v1998_v33  ;;  %v607_v52 = vsel %vm1429_vm11, %v602_v0, 0.0  ;;  %vm2062_vm3 = vmmov %vm2059_vm12 }
 0x33f   :  { %v1756_v31 = vsel %vm2056_vm2, %v1215_v23, %v1205_v22  ;;  %v1181_v38 = vunpack.i.h.bf16 %v1179_v24  ;;  %v605_v41 = vsel %vm2058_vm6, %v604_v56, 0.0  ;;  %v1180_v32 = vunpack.i.l.bf16 %v1179_v24 }
 0x340   :  { %v1773_v62 = vsel %vm2060_vm8, %v1206_v21, %v1216_v27  ;;  %v712_v5 = vrot.slane %v601_v36, 4  ;;  %v1775_v12 = vpop.permute.xlu0 %1223  ;;  %v652_v49 = vsel %vm2056_vm2, %v1216_v27, %v1215_v23  ;;  %v653_v6 = vsel %vm1407_vm7, %v1756_v31, 0.0 }
 0x341   :  { %v634_v53 = vsel %vm2059_vm12, %v1166_v47, %v1181_v38  ;;  %v636_v44 = vsel %vm2061_vm14, %v1180_v32, %v1165_v7  ;;  %v709_v37 = vrot.slane %v605_v41, 4  ;;  %v633_v46 = vsel %vm2062_vm3, %v1181_v38, %v1180_v32 }
 0x342   :  { %v1184_v40 = vpop.permute.xlu1 %1183  ;;  %v711_v9 = vrot.slane %v607_v52, 4  ;;  %v637_v11 = vsel %vm2034_vm1, %v636_v44, 0.0  ;;  %vm2063_vm12 = vnez %v2006_v43  ;;  %vm2064_vm8 = vcmp.lt.s32.totalorder %v1383_v10, 17 }
 0x343   :  { %v1186_v39 = vunpack.i.h.bf16 %v1184_v40  ;;  %v1185_v45 = vunpack.i.l.bf16 %v1184_v40  ;;  %v639_v13 = vsel %vm2063_vm12, %v634_v53, 0.0  ;;  %v1226_v16 = vunpack.i.h.bf16 %v1775_v12  ;;  %vm2065_vm14 = vmmov %vm2064_vm8 }
 0x344   :  { %v1225_v20 = vunpack.i.l.bf16 %v1775_v12  ;;  %v640_v58 = vsel %vm1419_vm10, %v633_v46, 0.0  ;;  %vm2066_vm2 = vmmov %vm2064_vm8  ;;  %v721_v23 = vrot.slane %v637_v11, 4  ;;  %v723_v24 = vrot.slane %v639_v13, 4 }
 0x345   :  { %v587_v7 = vsel %vm2064_vm8, %v1185_v45, %v1186_v39  ;;  %v588_v17 = vsel %vm2065_vm14, %v1195_v15, %v1185_v45  ;;  %v586_v21 = vsel %vm2066_vm2, %v1186_v39, %v1196_v14  ;;  %vm2067_vm3 = vcmp.lt.s32.totalorder %v1383_v10, 15  ;;  %vm2069_vm14 = vmand %vm2058_vm6, %vm2034_vm1 }
 0x346   :  { %v1189_v47 = vpop.permute.xlu1 %1188  ;;  %v590_v22 = vsel %vm1403_vm5, %v587_v7, 0.0  ;;  %vm2068_vm8 = vcmask 1043456   ;;  %v589_v25 = vsel %vm2069_vm14, %v588_v17, 0.0  ;;  %v724_v26 = vrot.slane %v640_v58, 4  ;;  %vm2070_vm2 = vmand %vm1429_vm11, %vm2063_vm12 }
 0x347   :  { %v1191_v1 = vunpack.i.h.bf16 %v1189_v47  ;;  %v1190_v18 = vunpack.i.l.bf16 %v1189_v47  ;;  %v756_v15 = vsel %vm2068_vm8, %v592_v54, %v712_v5  ;;  %v591_v31 = vsel %vm2070_vm2, %v586_v21, 0.0  ;;  %vm2074_vm14 = vmmov %vm2073_vm9 }
 0x348   :  { %vm2075_vm10 = vmmov %vm2073_vm9  ;;  %v656_v11 = vsel %vm1444_vm13, %v652_v49, 0.0  ;;  %v734_v7 = vrot.slane %v654_v57, 4  ;;  %v733_v58 = vrot.slane %v653_v6, 4 }
 0x349   :  { %v619_v51 = vsel %vm2067_vm3, %v1190_v18, %v1191_v1  ;;  %vm2071_vm3 = vmmov %vm2068_vm8 }
 0x34a   :  { %v1199_v56 = vpop.permute.xlu1 %1198  ;;  %v622_v14 = vsel %vm1399_vm4, %v619_v51, 0.0  ;;  %v754_v36 = vsel %vm2071_vm3, %v590_v22, %v710_v50  ;;  %vm2072_vm8 = vmmov %vm2071_vm3  ;;  %v736_v22 = vrot.slane %v656_v11, 4 }
 0x34b   :  { %v1201_v27 = vunpack.i.h.bf16 %v1199_v56  ;;  %v1200_v0 = vunpack.i.l.bf16 %v1199_v56  ;;  %v758_v38 = vsel %vm2072_vm8, %v622_v14, %v722_v19  ;;  %vm2076_vm4 = vmand %vm2058_vm6, %vm1407_vm7 }
 0x34c   :  { %v1061_v39 = vpack.c.bf16 %v758_v38, %v754_v36  ;;  %vm2077_vm2 = vmand %vm1429_vm11, %vm1471_vm15  ;;  %vm2082_vm11 = vcmp.lt.s32.totalorder %v1383_v10, 112 }
 0x34d   :  { %v617_v40 = vsel %vm2073_vm9, %v1201_v27, %v1200_v0  ;;  %v618_v41 = vsel %vm2074_vm14, %v1191_v1, %v1201_v27  ;;  %v620_v32 = vsel %vm2075_vm10, %v1200_v0, %v1190_v18  ;;  %vm2078_vm9 = vmmov %vm2071_vm3  ;;  %vm2084_vm14 = vnez %v2010_v60  ;;  %v576_v60 = vld [vmem:[%s1962_s4] sm:$0xf] }
 0x34e   :  { %v621_v45 = vsel %vm2076_vm4, %v620_v32, 0.0  ;;  %v623_v19 = vsel %vm2077_vm2, %v618_v41, 0.0  ;;  %v1209_v50 = vpop.permute.xlu1 %1208  ;;  %v753_v52 = vsel %vm2078_vm9, %v589_v25, %v709_v37  ;;  %v624_v53 = vsel %vm1444_vm13, %v617_v40, 0.0  ;;  %1062 = vmatprep.subr.bf16.mxu0 %v1061_v39  ;;  %vm2079_vm10 = vmmov %vm2071_vm3 }
 0x34f   :  { %v1211_v54 = vunpack.i.h.bf16 %v1209_v50  ;;  %v1210_v5 = vunpack.i.l.bf16 %v1209_v50  ;;  %v757_v33 = vsel %vm2079_vm10, %v621_v45, %v721_v23  ;;  %v760_v12 = vsel %vm2071_vm3, %v624_v53, %v724_v26  ;;  %vm2080_vm4 = vmmov %vm2071_vm3  ;;  %v692_v23 = vpop.permute.xlu0 %691 }
 0x350   :  { %v1063_v44 = vpack.c.bf16 %v757_v33, %v753_v52  ;;  %v1069_v46 = vpack.c.bf16 %v760_v12, %v756_v15  ;;  %v755_v42 = vsel %vm2080_vm4, %v591_v31, %v711_v9  ;;  %vm2081_vm6 = vmmov %vm2071_vm3  ;;  %v655_v9 = vsel %vm1471_vm15, %v1773_v62, 0.0 }
 0x351   :  { %v759_v47 = vsel %vm2081_vm6, %v623_v19, %v723_v24  ;;  %v682_v37 = vsel %vm2082_vm11, %v1210_v5, %v1211_v54  ;;  %vm2083_vm8 = vmmov %vm2082_vm11  ;;  %vm2086_vm9 = vcmp.lt.s32.totalorder %v1383_v10, 113  ;;  %v735_v15 = vrot.slane %v655_v9, 4 }
 0x352   :  { %v1071_v13 = vpack.c.bf16 %v759_v47, %v755_v42  ;;  %v684_v17 = vsel %vm2083_vm8, %v1226_v16, %v1225_v20  ;;  %v686_v1 = vsel %vm2084_vm14, %v682_v37, 0.0  ;;  %v1219_v18 = vpop.permute.xlu1 %1218  ;;  %1064 = vmatpush1.bf16.msra.mxu0 %v1063_v44  ;;  %1070 = vmatprep.subr.bf16.mxu1 %v1069_v46  ;;  %vm2085_vm2 = vmmov %vm2083_vm8  ;;  %v762_v27 = vsel %vm2080_vm4, %v1702_v8, %v734_v7 }
 0x353   :  { %v1221_v49 = vunpack.i.h.bf16 %v1219_v18  ;;  %v1220_v21 = vunpack.i.l.bf16 %v1219_v18  ;;  %v688_v57 = vsel %vm1535_vm0, %v684_v17, 0.0  ;;  %v681_v24 = vsel %vm2085_vm2, %v1211_v54, %v1226_v16  ;;  %vm2087_vm10 = vmmov %vm2085_vm2  ;;  %v690_v19 = vpop.permute.xlu0 %689 }
 0x354   :  { %1072 = vmatpush1.bf16.msra.mxu1 %v1071_v13  ;;  %v746_v51 = vrot.slane %v686_v1, 4  ;;  %v683_v62 = vsel %vm2087_vm10, %v1225_v20, %v1210_v5  ;;  %vm2088_vm3 = vmand %vm2084_vm14, %vm1403_vm5  ;;  %v748_v31 = vrot.slane %v688_v57, 4  ;;  %v747_v36 = vrot.slane %v681_v24, 4 }
 0x355   :  { %v666_v56 = vsel %vm2086_vm9, %v1220_v21, %v1221_v49  ;;  %vm2089_vm6 = vmmov %vm2080_vm4  ;;  %v745_v40 = vrot.slane %v683_v62, 4  ;;  %vm2095_vm10 = vnez %v2002_v35  ;;  %v763_v45 = vsel %vm2080_vm4, %v1704_v63, %v735_v15 }
 0x356   :  { %v1229_v6 = vpop.permute.xlu1 %1228  ;;  %v670_v25 = vsel %vm2088_vm3, %v666_v56, 0.0  ;;  %vm2090_vm11 = vmmov %vm2080_vm4 }
 0x357   :  { %v1231_v0 = vunpack.i.h.bf16 %v1229_v6  ;;  %v1230_v16 = vunpack.i.l.bf16 %v1229_v6  ;;  %v766_v14 = vsel %vm2089_vm6, %v670_v25, %v746_v51  ;;  %v761_v26 = vsel %vm2090_vm11, %v1700_v55, %v733_v58  ;;  %vm2091_vm8 = vmmov %vm2080_vm4 }
 0x358   :  { %v1065_v20 = vpack.c.bf16 %v766_v14, %v762_v27  ;;  %v764_v38 = vsel %vm2091_vm8, %v1706_v4, %v736_v22  ;;  %vm2092_vm5 = vmmov %vm2086_vm9  ;;  %vm2097_vm6 = vcmp.lt.s32.totalorder %v1383_v10, 111 }
 0x359   :  { %v665_v29 = vsel %vm2092_vm5, %v1221_v49, %v1231_v0  ;;  %vm2093_vm2 = vmmov %vm2092_vm5  ;;  %vm2102_vm5 = vnez %v1992_v28 }
 0x35a   :  { %v667_v8 = vsel %vm2093_vm2, %v1230_v16, %v1220_v21  ;;  %vm2094_vm9 = vmmov %vm2093_vm2  ;;  %v671_v55 = vsel %vm2063_vm12, %v665_v29, 0.0  ;;  %v694_v39 = vpop.permute.xlu1 %693  ;;  %1066 = vmatprep.subr.bf16.mxu0 %v1065_v20 }
 0x35b   :  { %v668_v41 = vsel %vm2094_vm9, %v1231_v0, %v1230_v16  ;;  %v669_v32 = vsel %vm2034_vm1, %v667_v8, 0.0  ;;  %vm2096_vm3 = vmand %vm1535_vm0, %vm2095_vm10  ;;  %v698_v50 = vsel %vm2097_vm6, %v692_v23, %v694_v39  ;;  %v926_v16 = vld [vmem:[%s1963_s5] sm:$0xf] }
 0x35c   :  { %v672_v4 = vsel %vm2096_vm3, %v668_v41, 0.0  ;;  %vm2098_vm11 = vmmov %vm2080_vm4 }
 0x35d   :  { %v765_v34 = vsel %vm2098_vm11, %v669_v32, %v745_v40  ;;  %vm2099_vm1 = vmmov %vm2080_vm4  ;;  %vm2110_vm11 = vcmask 293888  }
 0x35e   :  { %v768_v43 = vsel %vm2099_vm1, %v672_v4, %v748_v31  ;;  %vm2100_vm12 = vmmov %vm2099_vm1  ;;  %v1067_v53 = vpack.c.bf16 %v765_v34, %v761_v26  ;;  %v696_v33 = vpop.permute.xlu1 %695  ;;  %v927_v31 = vld [vmem:[%s1964_s6] sm:$0xf] }
 0x35f   :  { %v767_v52 = vsel %vm2100_vm12, %v671_v55, %v747_v36  ;;  %v1073_v54 = vpack.c.bf16 %v768_v43, %v764_v38  ;;  %vm2101_vm8 = vmmov %vm2097_vm6 }
 0x360   :  { %v1075_v5 = vpack.c.bf16 %v767_v52, %v763_v45  ;;  %v699_v35 = vsel %vm2101_vm8, %v690_v19, %v692_v23  ;;  %vm2103_vm2 = vmand %vm2084_vm14, %vm2102_vm5  ;;  %1068 = vmatpush1.bf16.msra.mxu0 %v1067_v53 }
 0x361   :  { %v702_v63 = vsel %vm2103_vm2, %v698_v50, 0.0  ;;  %1074 = vmatprep.subr.bf16.mxu1 %v1073_v54  ;;  %vm2104_vm9 = vmmov %vm2097_vm6  ;;  %v701_v46 = vsel %vm1407_vm7, %v699_v35, 0.0 }
 0x362   :  { %v697_v12 = vsel %vm2104_vm9, %v694_v39, %v696_v33  ;;  %vm2105_vm10 = vmmov %vm2097_vm6  ;;  %1076 = vmatpush1.bf16.msra.mxu1 %v1075_v5 }
 0x363   :  { %v700_v44 = vsel %vm2105_vm10, %v696_v33, %v690_v19  ;;  %vm2106_vm3 = vmmov %vm2099_vm1  ;;  %v703_v10 = vsel %vm1471_vm15, %v697_v12, 0.0 }
 0x364   :  { %1039 = vmatprep.subr.msk.mxu0 %vm2106_vm3, %v702_v63  ;;  %vm2107_vm4 = vmand %vm1535_vm0, %vm1444_vm13 }
 0x365   :  { %v704_v28 = vsel %vm2107_vm4, %v700_v44, 0.0  ;;  %vm2108_vm14 = vmmov %vm2099_vm1 }
 0x366   :  { %1042 = vmatprep.subr.msk.mxu1 %vm2108_vm14, %v704_v28  ;;  %vm2109_vm6 = vmmov %vm2099_vm1 }
 0x367   :  { %1040 = vmatpush1.msk.msra.mxu0 %vm2109_vm6, %v701_v46  ;;  %1043 = vmatpush1.msk.msra.mxu1 %vm2099_vm1, %v703_v10  ;;  %vm2111_vm0 = vmmov %vm2110_vm11 }
 0x368   :  { %1041 = vmatmul.mubr.msk.f32.vlgmr.msra.gmra.mrb[2].mxu0 %vm2110_vm11, %v576_v60  ;;  %1044 = vmatmul.mubr.msk.f32.vlgmr.msra.gmra.mrb[2].mxu1 %vm2111_vm0, %v576_v60  ;;  %vm2112_vm13 = vmmov %vm2099_vm1 }
 0x369   :  { %vm2113_vm7 = vmmov %vm2099_vm1 }
 0x36a   :  { %vm2114_vm12 = vmmov %vm2099_vm1 }
 0x36b   :  { %vm2115_vm15 = vmmov %vm2099_vm1 }
 0x36c   :  { %vm2116_vm8 = vmmov %vm2099_vm1 }
 0x36d   :  { %vm2117_vm5 = vmmov %vm2099_vm1 }
 0x36e   :  { %vm2118_vm2 = vmmov %vm2099_vm1 }
 0x36f   :  { %vm2119_vm9 = vmmov %vm2099_vm1 }
 0x43b   :  { %v850_v48 = vpop.f32.mrb[2].mxu0  ;;  %v921_v30 = vpop.f32.mrb[2].mxu1 }
 0x43c   :  { %v928_v59 = vsel %vm2112_vm13, %v850_v48, 0.0  ;;  %v937_v42 = vmul.f32 %v850_v48, %v850_v48  ;;  %v852_v47 = vpop.f32.mrb[3].mxu0  ;;  %v931_v61 = vsel %vm2114_vm12, %v921_v30, 0.0  ;;  %v939_v13 = vmul.f32 %v921_v30, %v921_v30  ;;  %v923_v7 = vpop.f32.mrb[3].mxu1 }
 0x43d   :  { %v929_v11 = vsel %vm2113_vm7, %v852_v47, 0.0  ;;  %v938_v37 = vmul.f32 %v852_v47, %v852_v47  ;;  %v940_v9 = vmul.f32 %v923_v7, %v923_v7  ;;  %v933_v22 = vsel %vm2118_vm2, %v923_v7, 0.0 }
 0x43e   :  { %v941_v17 = vsel %vm2115_vm15, %v937_v42, 0.0  ;;  %v930_v1 = vadd.f32 %v929_v11, %v928_v59  ;;  %v944_v58 = vsel %vm2117_vm5, %v939_v13, 0.0  ;;  %v1254_v42 = vld [vmem:[%s1958_s0] sm:$0xff] }
 0x43f   :  { %v942_v18 = vsel %vm2116_vm8, %v938_v37, 0.0  ;;  %v946_v24 = vsel %vm2119_vm9, %v940_v9, 0.0  ;;  %v1255_v37 = vld [vmem:[%s1958_s0 + $0x8] sm:$0xff] }
 0x440   :  { %v943_v49 = vadd.f32 %v942_v18, %v941_v17  ;;  %v932_v21 = vadd.f32 %v931_v61, %v930_v1 }
 0x442   :  { %v934_v57 = vadd.f32 %v933_v22, %v932_v21  ;;  %v945_v23 = vadd.f32 %v944_v58, %v943_v49 }
 0x444   :  { %935 = vadd.xlane.f32.xlu0 %v934_v57  ;;  %v947_v51 = vadd.f32 %v946_v24, %v945_v23 }
 0x446   :  { %948 = vadd.xlane.f32.xlu1 %v947_v51 }
 0x4d1   :  { %v936_v56 = vpop.xlane.xlu0 %935 }
 0x4d2   :  { %v950_v15 = vmul.f32 0.001953125, %v936_v56 }
 0x4d3   :  { %v949_v62 = vpop.xlane.xlu1 %948 }
 0x4d4   :  { %v952_v6 = vmul.f32 %v950_v15, %v950_v15  ;;  %v951_v25 = vmul.f32 0.001953125, %v949_v62 }
 0x4d6   :  { %v953_v27 = vsub.f32 %v951_v25, %v952_v6 }
 0x4d8   :  { %v954_v0 = vadd.f32 1e-05, %v953_v27 }
 0x4da   :  { %1244 = vrsqrt.f32 %v954_v0 }
 0x4e4   :  { %v1245_v14 = vpop.eup %1244 }
 0x4e5   :  { %v956_v26 = vmul.f32 %v1245_v14, %v926_v16 }
 0x4e7   :  { %961 = vperm.xlu0 %1160, %v956_v26   ;;  %v957_v36 = vmul.f32 %v956_v26, %v950_v15 }
 0x4e9   :  { %v958_v20 = vsub.f32 %v927_v31, %v957_v36 }
 0x4eb   :  { %970 = vperm.xlu1 %1161, %v958_v20  }
 0x566   :  { %v962_v38 = vpop.permute.xlu0 %961 }
 0x567   :  { %v964_v40 = vmul.f32 %v962_v38, %v850_v48  ;;  %v965_v29 = vmul.f32 %v962_v38, %v852_v47  ;;  %v966_v8 = vmul.f32 %v962_v38, %v921_v30  ;;  %v967_v41 = vmul.f32 %v962_v38, %v923_v7 }
 0x56a   :  { %v971_v32 = vpop.permute.xlu1 %970 }
 0x56b   :  { %v973_v55 = vadd.f32 %v971_v32, %v964_v40  ;;  %v974_v39 = vadd.f32 %v971_v32, %v965_v29  ;;  %v975_v4 = vadd.f32 %v971_v32, %v966_v8  ;;  %v976_v45 = vadd.f32 %v971_v32, %v967_v41 }
 0x56d   :  { %v981_v19 = vmul.f32 0.70710677, %v973_v55  ;;  %v982_v50 = vmul.f32 0.70710677, %v974_v39  ;;  %v983_v34 = vmul.f32 0.70710677, %v975_v4 }
 0x56e   :  { %v984_v43 = vmul.f32 0.70710677, %v976_v45  ;;  %v977_v54 = vmul.f32 0.5, %v973_v55  ;;  %v978_v63 = vmul.f32 0.5, %v974_v39  ;;  %v979_v44 = vmul.f32 0.5, %v975_v4 }
 0x56f   :  { %1246 = verf.f32 %v981_v19  ;;  %v980_v46 = vmul.f32 0.5, %v976_v45 }
 0x570   :  { %1248 = verf.f32 %v982_v50 }
 0x571   :  { %1250 = verf.f32 %v983_v34 }
 0x572   :  { %1252 = verf.f32 %v984_v43 }
 0x579   :  { %v1247_v52 = vpop.eup %1246 }
 0x57a   :  { %v1249_v53 = vpop.eup %1248  ;;  %v989_v5 = vadd.f32 1.0, %v1247_v52 }
 0x57b   :  { %v1251_v35 = vpop.eup %1250  ;;  %v990_v33 = vadd.f32 1.0, %v1249_v53 }
 0x57c   :  { %v1253_v12 = vpop.eup %1252  ;;  %v991_v28 = vadd.f32 1.0, %v1251_v35  ;;  %v993_v60 = vmul.f32 %v989_v5, %v977_v54 }
 0x57d   :  { %v992_v10 = vadd.f32 1.0, %v1253_v12  ;;  %v994_v48 = vmul.f32 %v990_v33, %v978_v63 }
 0x57e   :  { %v995_v59 = vmul.f32 %v991_v28, %v979_v44  ;;  %v997_v47 = vadd.f32 %v1254_v42, %v993_v60 }
 0x57f   :  { %v996_v30 = vmul.f32 %v992_v10, %v980_v46  ;;  %v998_v11 = vadd.f32 %v994_v48, %v1349_v3 }
 0x580   :  { %v999_v61 = vadd.f32 %v1255_v37, %v995_v59  ;;  %v1001_v13 = vmul.f32 0.7072136, %v997_v47 }
 0x581   :  { %v1000_v7 = vadd.f32 %v996_v30, %v1345_v2  ;;  %v1002_v17 = vmul.f32 0.7072136, %v998_v11 }
 0x582   :  { %v1003_v1 = vmul.f32 0.7072136, %v999_v61 }
 0x583   :  { %v1004_v18 = vmul.f32 0.7072136, %v1000_v7  ;;  %v1007_v9 = vcombine.low %v1001_v13, %v1002_v17 }
 0x585   :  { %1009 = vst [vmem:[#allocation2] sm:$0xff] %v1007_v9  ;;  %v1012_v58 = vcombine.low %v1003_v1, %v1004_v18 }
 0x587   :  { %1015 = vst [vmem:[#allocation2 + $0x8] sm:$0xff] %v1012_v58 }
 0x588   :  { %1267 = shalt.err (!%p1264_p4)
}
 0x589   :  { %s1268_s27 = scalar_lea.hbm %s1965_s7, 256 }
 0x58a   :  { %p1269_p5 = scmp.ne.s32.totalorder %s1965_s7, %s1268_s27  ;;  %p1272_p6 = scmp.lt.u32.totalorder %s1268_s27, %s1965_s7 }
 0x58c   :  { %p1274_p7 = pnand %p1272_p6, %p1269_p5 }
 0x58e   :  { %1277 = shalt.err (!%p1274_p7)
}
 0x58f   :  { %s1291_s9 = smov 128   ;;  %s1292_s10 = smov 8  }
 0x590   :  { %1027 = dma.vmem_to_hbm [thread:$0]  %s1022_s24, 256, %s1965_s7, [#allocation3], %s1291_s9, %s1291_s9, %s1292_s10  }
 0x591   :  { %1278 = dma.done.wait [#allocation3], 256  }
 0x592   :  { %1279 = vsyncadd [#allocation3], 4294967040 }
 0x593   :  { %1031 = vsyncpa [#allocation3], 1 }

</bundles_post_ra>
